<compile_context>
chip_gen: v5e
topology: v5e:2x2
jax: 0.10.0
libtpu: 0.0.40
codegen_flags: <defaults>
</compile_context>

<pallas_src>
import functools

import jax
import jax.numpy as jnp
from jax import lax
from jax.experimental import pallas as pl
from jax.experimental.pallas import tpu as pltpu


def _compiler_params(semantics, block_bytes, scratch_bytes=0):
    # 2x for double-buffered pipeline blocks + scratch + a few MiB headroom.
    need = 2 * block_bytes + scratch_bytes + (4 << 20)
    limit = int(min(max(need, 16 << 20), 40 << 20))   # cap keeps headroom on v7x
    return pltpu.CompilerParams(dimension_semantics=semantics,
                                vmem_limit_bytes=limit)


# ---------------------------------------------------------------------------
# Kernel 1: covariance per support class (one class per grid step)
# ---------------------------------------------------------------------------
def _cov_kernel(x_ref, out_ref, *, inv_n, inv_nm1):
    x = x_ref[0]                                         # (C, Bs*hw) f32
    mean = jnp.sum(x, axis=1, keepdims=True) * inv_n     # (C, 1) exact mean
    xc = x - mean                                        # exact centering
    # Single MXU contraction over K = Bs*hw (no transpose of the data tile).
    cov = lax.dot_general(xc, xc, (((1,), (1,)), ((), ())),
                          preferred_element_type=jnp.float32)   # (C, C)
    out_ref[0] = cov * inv_nm1


def cal_covariance_pallas(support):
    """support: (W, C, Bs*hw) float32 -> (W, C, C) covariance matrices."""
    W, C, K = support.shape
    assert K > 1, "need Bs*h*w > 1 for the unbiased covariance divisor"
    kernel = functools.partial(_cov_kernel, inv_n=1.0 / K, inv_nm1=1.0 / (K - 1))
    block_bytes = (C * K + C * C) * 4
    return pl.pallas_call(
        kernel,
        out_shape=jax.ShapeDtypeStruct((W, C, C), jnp.float32),
        grid=(W,),
        in_specs=[pl.BlockSpec((1, C, K), lambda j: (j, 0, 0))],
        out_specs=pl.BlockSpec((1, C, C), lambda j: (j, 0, 0)),
        compiler_params=_compiler_params(("parallel",), block_bytes),
    )(support)


# ---------------------------------------------------------------------------
# Kernel 2: covariance-metric similarity — all classes + Bt queries per step
# ---------------------------------------------------------------------------
def _sim_kernel(q_ref, cov_ref, out_ref, *, num_classes, channels):
    q = q_ref[0]                                         # (C, Bt*hw)
    covs = cov_ref[...]                                  # (W*C, C), VMEM-resident
    # One MXU matmul per grid step for all W classes and Bt queries at once.
    m = jnp.dot(covs, q, preferred_element_type=jnp.float32)      # (W*C, Bt*hw)
    m = m.reshape(num_classes, channels, q.shape[1])              # (W, C, Bt*hw)
    # diag(Qᵀ Cov Q)[p] = Σ_c Q[c,p]·(Cov@Q)[c,p]; one full-block lane-dense store.
    out_ref[0] = jnp.sum(m * q[None, :, :], axis=1)               # (W, Bt*hw)


def cal_similarity_pallas(q_blocks, cov_stack, num_classes, channels):
    """q_blocks: (Nb, C, Bt*hw) normalized queries; cov_stack: (W*C, C)
       -> (Nb, W, Bt*hw)."""
    Nb, C, N = q_blocks.shape
    WC = cov_stack.shape[0]
    W = num_classes
    kernel = functools.partial(_sim_kernel, num_classes=W, channels=channels)
    block_bytes = (C * N + WC * C + W * N) * 4
    return pl.pallas_call(
        kernel,
        out_shape=jax.ShapeDtypeStruct((Nb, W, N), jnp.float32),
        grid=(Nb,),                                      # query-block axis only
        in_specs=[
            pl.BlockSpec((1, C, N), lambda b: (b, 0, 0)),   # query block per step
            pl.BlockSpec((WC, C), lambda b: (0, 0)),        # cov stack resident
        ],
        out_specs=pl.BlockSpec((1, W, N), lambda b: (b, 0, 0)),
        compiler_params=_compiler_params(("parallel",), block_bytes),
    )(q_blocks, cov_stack)


# ---------------------------------------------------------------------------
# CovaBlock forward
# ---------------------------------------------------------------------------
def cova_block_forward(x1, x2_list, *, query_tile=8):
    """x1: (B, C, h, w); x2_list: list of W arrays (Bs, C, h, w) -> (B, 1, W*h*w)."""
    B, C, h, w = x1.shape
    hw = h * w
    W = len(x2_list)
    Bs = x2_list[0].shape[0]

    # Support: one (C, Bs*hw) slab per class (layout plumbing, done once by XLA).
    support = (jnp.stack(x2_list, axis=0)                  # (W, Bs, C, h, w)
               .reshape(W, Bs, C, hw)
               .transpose(0, 2, 1, 3)                      # (W, C, Bs, hw)
               .reshape(W, C, Bs * hw)
               .astype(jnp.float32))
    cov_mats = cal_covariance_pallas(support)              # (W, C, C)
    cov_stack = cov_mats.reshape(W * C, C)                 # single resident operand

    # Queries: hoisted L2 normalization via rsqrt (once per query).
    # NOTE: matches torch semantics (no eps) — an all-zero channel row would be
    # non-finite in both implementations.
    q = x1.reshape(B, C, hw).astype(jnp.float32)
    qn = q * lax.rsqrt(jnp.sum(q * q, axis=2, keepdims=True))

    Bt = query_tile        # sweep 8..32; blocks are far below the VMEM ceiling
    B_pad = ((B + Bt - 1) // Bt) * Bt
    if B_pad != B:
        qn = jnp.pad(qn, ((0, B_pad - B), (0, 0), (0, 0)))  # zero rows -> zero sims
    Nb = B_pad // Bt
    q_blocks = (qn.reshape(Nb, Bt, C, hw)
                  .transpose(0, 2, 1, 3)                    # (Nb, C, Bt, hw)
                  .reshape(Nb, C, Bt * hw))

    sim = cal_similarity_pallas(q_blocks, cov_stack, W, C)  # (Nb, W, Bt*hw)

    # Unpack (Nb, W, Bt, hw) -> (B, W*hw): class-major per query, as in torch.
    out = (sim.reshape(Nb, W, Bt, hw)
              .transpose(0, 2, 1, 3)
              .reshape(B_pad, W * hw))[:B]
    return out.reshape(B, 1, W * hw)


# ---------------------------------------------------------------------------
# Pure-JAX reference (mirrors the PyTorch module) for a correctness check
# ---------------------------------------------------------------------------
def cova_block_reference(x1, x2_list):
    B, C, h, w = x1.shape
    covs = []
    for x2 in x2_list:
        Bs = x2.shape[0]
        X = jnp.transpose(x2, (1, 0, 2, 3)).reshape(C, -1)
        X = X - jnp.mean(X, axis=1, keepdims=True)
        covs.append((X @ X.T) / (h * w * Bs - 1))
    out = []
    for b in range(B):
        Q = x1[b].reshape(C, -1)
        Q = Q / jnp.linalg.norm(Q, axis=1, keepdims=True)
        sims = []
        for cov in covs:
            temp = Q.T @ cov @ Q
            sims.append(jnp.diag(temp))
        out.append(jnp.concatenate(sims)[None, None, :])
    return jnp.concatenate(out, axis=0)


if __name__ == "__main__":
    key = jax.random.PRNGKey(0)
    B, C, h, w = 2, 8, 16, 16        # query batch, channels, spatial
    W, Bs = 3, 4                     # number of support classes, shots per class

    k1, *ks = jax.random.split(key, 1 + W)
    x1 = jax.random.normal(k1, (B, C, h, w), dtype=jnp.float32)
    x2_list = [jax.random.normal(k, (Bs, C, h, w), dtype=jnp.float32) for k in ks]

    out = jax.block_until_ready(cova_block_forward(x1, x2_list))

    ref = cova_block_reference(x1, x2_list)
    assert out.shape == (B, 1, W * h * w), out.shape
    assert jnp.allclose(out, ref, atol=1e-4, rtol=1e-4), "mismatch vs reference"

    print("KERNEL_OK")
</pallas_src>

<mosaic_0001>
module attributes {stable_mosaic.version = 11 : i64} {
  func.func @_cov_kernel(%arg0: i32, %arg1: memref<1x8x1024xf32, #tpu.memory_space<vmem>>, %arg2: memref<1x8x8xf32, #tpu.memory_space<vmem>>) attributes {dimension_semantics = [#tpu.dimension_semantics<parallel>], iteration_bounds = array<i64: 3>, scalar_prefetch = 0 : i64, scratch_operands = 0 : i64, tpu.core_type = #tpu.core_type<tc>, window_params = [{transform_indices = @transform_0, window_bounds = array<i64: 1, 8, 1024>}, {transform_indices = @transform_1, window_bounds = array<i64: 1, 8, 8>}]} {
    %c0 = arith.constant 0 : index
    %c0_0 = arith.constant 0 : index
    %c0_1 = arith.constant 0 : index
    %0 = vector.load %arg1[%c0, %c0_0, %c0_1] : memref<1x8x1024xf32, #tpu.memory_space<vmem>>, vector<1x8x1024xf32>
    %1 = vector.shape_cast %0 : vector<1x8x1024xf32> to vector<8x1024xf32>
    %cst = arith.constant dense<0.000000e+00> : vector<8xf32>
    %2 = vector.multi_reduction <add>, %1, %cst [1] : vector<8x1024xf32> to vector<8xf32>
    %3 = vector.shape_cast %2 : vector<8xf32> to vector<8x1xf32>
    %cst_2 = arith.constant 9.765625E-4 : f32
    %4 = vector.broadcast %cst_2 : f32 to vector<8x1xf32>
    %5 = arith.mulf %3, %4 : vector<8x1xf32>
    %6 = vector.broadcast %5 : vector<8x1xf32> to vector<8x1024xf32>
    %7 = arith.subf %1, %6 : vector<8x1024xf32>
    %cst_3 = arith.constant dense<0.000000e+00> : vector<8x8xf32>
    %8 = tpu.matmul %7, %7, %cst_3 {dimension_numbers = #tpu.dot_dimension_numbers<[1], [1], [0], [0], [0, 0, 1, 0], [], []>} : vector<8x1024xf32>, vector<8x1024xf32>, vector<8x8xf32> -> vector<8x8xf32>
    %cst_4 = arith.constant 9.77517105E-4 : f32
    %9 = vector.broadcast %cst_4 : f32 to vector<8x8xf32>
    %10 = arith.mulf %8, %9 : vector<8x8xf32>
    %c0_5 = arith.constant 0 : index
    %c0_6 = arith.constant 0 : index
    %c0_7 = arith.constant 0 : index
    %11 = vector.load %arg2[%c0_5, %c0_6, %c0_7] : memref<1x8x8xf32, #tpu.memory_space<vmem>>, vector<1x8x8xf32>
    %12 = vector.shape_cast %11 : vector<1x8x8xf32> to vector<8x8xf32>
    %13 = vector.shape_cast %10 : vector<8x8xf32> to vector<1x8x8xf32>
    tpu.vector_store %arg2[%c0_5, %c0_6, %c0_7], %13 {strides = array<i32>} : memref<1x8x8xf32, #tpu.memory_space<vmem>>, vector<1x8x8xf32>,
    return
  }
  func.func @transform_0(%arg0: i32) -> (i32, i32, i32) {
    %c0_i32 = arith.constant 0 : i32
    %c0_i32_0 = arith.constant 0 : i32
    %c0_i32_1 = arith.constant 0 : i32
    return %arg0, %c0_i32, %c0_i32_0 : i32, i32, i32
  }
  func.func @transform_1(%arg0: i32) -> (i32, i32, i32) {
    %c0_i32 = arith.constant 0 : i32
    %c0_i32_0 = arith.constant 0 : i32
    %c0_i32_1 = arith.constant 0 : i32
    return %arg0, %c0_i32, %c0_i32_0 : i32, i32, i32
  }
}

</mosaic_0001>

<bundles_post_ra>
// kernel: tpu_custom_call.1
= control target key start
LH: loop header
LB: loop body
LE: loop exit
PB: predicated region body
PF: predicated region fallthrough
CT: control target
= control target key end

     0   :  { %6 = vsyncpa [#allocation3], 0  ;;  %s704_s0 = inlined_call_operand.hbm [shape: f32[3,8,1024], index: 0, kind: input, shape index: {}]   ;;  %s705_s1 = inlined_call_operand.hbm [shape: f32[3,8,8], index: 1, kind: output, shape index: {}]  }
   0x1   :  { %8 = vsyncpa [#allocation3 + $0x1], 0 }
   0x2   :  { %9 = vsyncpa [#allocation4], 0 }
   0x3   :  { %11 = vsyncpa [#allocation4 + $0x1], 0  ;;  %s578_s6 = smov 0   ;;  %s580_s7 = smov 0  }
   0x4   :  { %s582_s8 = smov 0   ;;  %s584_s9 = smov 0  }
   0x5 LB: > { %s599_s10 = sadd.s32 4294967295, %s566_s9   ;;  %s410_s11 = sadd.s32 4294967294, %s566_s9   ;;  %s566_s9 = sphi %s584_s9, %s714_s9   ;;  %s562_s8 = sphi %s582_s8, %s713_s8   ;;  %s558_s7 = sphi %s580_s7, %s712_s7   ;;  %s554_s6 = sphi %s578_s6, %s711_s6  }
   0x6   : > { %s603_s12 = sadd.s32 1, %s566_s9   ;;  %s24_s13 = sadd.s32 1, %s562_s8 }
   0x7   : > { %s21_s14 = ssub.s32 %s566_s9, %s603_s12  ;;  %p31_p0 = scmp.ne.s32.totalorder %s562_s8, %s558_s7 }
   0x8   : > { %p22_p1 = scmp.eq.s32.totalorder %s21_s14, 0  ;;  %p32_p2 = scmp.eq.s32.totalorder %s566_s9, 0 }
   0x9   : > { %p37_p3 = scmp.ne.s32.totalorder %s558_s7, %s554_s6  ;;  %p38_p4 = scmp.eq.s32.totalorder %s599_s10, 0 }
   0xa   : > { %s615_s15 = scalar_select %p22_p1, %s562_s8, %s24_s13  }
   0xb   : > { %p617_p5 = por %p32_p2, %p31_p0  ;;  %p621_p6 = por %p38_p4, %p37_p3 }
   0xc   : > { %p61_p7 = scmp.eq.s32.totalorder %s599_s10, 2  ;;  %p67_p8 = scmp.eq.s32.totalorder %s410_s11, 2 }
   0xd   : > { %p436_p9 = scmp.lt.s32.totalorder %s566_s9, 3  ;;  %s87_s20 = sand.u32 1, %s562_s8  }
   0xe   : > { %p627_p10 = por %p61_p7, %p31_p0  ;;  %p631_p11 = por %p67_p8, %p37_p3 }
   0xf   : > { %s423_s21 = sshll.u32 %s566_s9, 6  ;;  %s413_s22 = sshll.u32 %s87_s20, 6 }
  0x10   : > { %s96_s25 = scalar_lea.hbm %s704_s0, %s423_s21  ;;  %s91_s27 = scalar_lea.vmem [#allocation2], %s413_s22 }
  0x11   : > { %s98_s26 = sshll.u32 %s96_s25, 4  ;;  %s100_s28 = sshll.u32 %s91_s27, 4  ;;  %s99_s26 = int_to_ptr.hbm [resolvable:$true] %s98_s26  ;;  %s101_s28 = int_to_ptr.vmem [resolvable:$true] %s100_s28 }
  0x12   : > { %p642_p12 = pnand %p436_p9, %p617_p5  ;;  %p416_p13 = scmp.ge.s32.totalorder %s566_s9, 1 }
  0x13   : > { %p105_p0 = scmp.lt.s32.totalorder %s566_s9, 4  ;;  %s88_s30 = scalar_lea.sflag [#allocation3], %s87_s20 }
  0x14   : > { %s470_s2 = sshra.s32 %s99_s26, 4  ;;  %p474_p2 = pneg %p642_p12  ;;  %s471_s2 = int_to_ptr.hbm [resolvable:$true] %s470_s2 }
  0x15   : > { %s472_s3 = scalar_lea.hbm %s471_s2, 64  ;;  %s477_s11 = scalar_lea.hbm %s704_s0, 192 }
  0x16   : > { %p473_p1 = scmp.ne.s32.totalorder %s471_s2, %s472_s3  ;;  %p478_p5 = scmp.lt.s32.totalorder %s471_s2, %s704_s0 }
  0x17   : > { %p479_p7 = scmp.lt.s32.totalorder %s477_s11, %s472_s3 }
  0x18   : > { %p475_p3 = pnand %p474_p2, %p473_p1 }
  0x19   : > { %p480_p8 = por %p479_p7, %p478_p5 }
  0x1a   : > { %p476_p4 = pneg %p475_p3 }
  0x1c   : > { %p481_p9 = pnand %p480_p8, %p476_p4 }
  0x1e   : > { %484 = shalt.err (!%p481_p9)
}
  0x1f   : > { %431 = dma.hbm_to_vmem [thread:$0]  (!%p642_p12), %s99_s26, 1024, %s101_s28, %s88_s30  }
  0x20   : > { %p106_p1 = pnand %p416_p13, %p105_p0 }
  0x21   : > { %s663_s16 = sand.u32 (!%p106_p1), 1, %s558_s7  }
  0x22   : > { %109 = sbr.rel (%p106_p1) target bundleno = 330 (0x14a), region = 24  ;;  %s417_s20 = sshll.u32 (!%p106_p1), %s663_s16, 6 }
  0x23   : > { %s112_s21 = scalar_lea.sflag (!%p106_p1), [#allocation3], %s663_s16  ;;  %s115_s22 = scalar_lea.vmem (!%p106_p1), [#allocation2], %s417_s20 }
  0x27   : > { %545 = dma.done.wait (%p621_p6), %s112_s21, 1024  }
  0x28   : > { %547 = vsyncadd (%p621_p6), %s112_s21, 4294966272  ;;  %v135_v0 = vld [vmem:[%s115_s22] sm:$0xff]  ;;  %v136_v1 = vld [vmem:[%s115_s22 + $0x8] sm:$0xff]  ;;  %s418_s17 = sshll.u32 %s663_s16, 3  ;;  %s420_s23 = sshll.u32 %s599_s10, 3  ;;  %vm322_vm0 = vcmask 64512  }
  0x29   : > { %v137_v2 = vld [vmem:[%s115_s22 + $0x10] sm:$0xff]  ;;  %v143_v3 = vadd.f32 %v136_v1, %v135_v0  ;;  %v138_v4 = vld [vmem:[%s115_s22 + $0x18] sm:$0xff]  ;;  %v139_v6 = vld [vmem:[%s115_s22 + $0x20] sm:$0xff]  ;;  %s335_s26 = scalar_lea.hbm %s705_s1, %s420_s23  ;;  %s134_s27 = scalar_lea.vmem [#allocation5], %s418_s17 }
  0x2a   : > { %v140_v8 = vld [vmem:[%s115_s22 + $0x28] sm:$0xff]  ;;  %v141_v10 = vld [vmem:[%s115_s22 + $0x30] sm:$0xff]  ;;  %v142_v12 = vld [vmem:[%s115_s22 + $0x38] sm:$0xff]  ;;  %s337_s28 = sshll.u32 %s134_s27, 4  ;;  %s339_s29 = sshll.u32 %s335_s26, 4  ;;  %s338_s28 = int_to_ptr.vmem [resolvable:$true] %s337_s28  ;;  %s340_s29 = int_to_ptr.hbm [resolvable:$true] %s339_s29 }
  0x2b   : > { %v144_v5 = vadd.f32 %v143_v3, %v137_v2  ;;  %s325_s10 = scalar_lea.sflag [#allocation4], %s663_s16  ;;  %s514_s30 = sshra.s32 %s340_s29, 4  ;;  %s515_s30 = int_to_ptr.hbm [resolvable:$true] %s514_s30 }
  0x2c   : > { %s516_s2 = scalar_lea.hbm %s515_s30, 8  ;;  %s520_s5 = scalar_lea.hbm %s705_s1, 24 }
  0x2d   : > { %v145_v7 = vadd.f32 %v144_v5, %v138_v4  ;;  %p517_p6 = scmp.ne.s32.totalorder %s515_s30, %s516_s2  ;;  %p521_p0 = scmp.lt.s32.totalorder %s515_s30, %s705_s1 }
  0x2e   : > { %p522_p2 = scmp.lt.s32.totalorder %s520_s5, %s516_s2 }
  0x2f   : > { %v146_v9 = vadd.f32 %v145_v7, %v139_v6  ;;  %p518_p12 = pnand %p517_p6, %p627_p10 }
  0x30   : > { %p523_p3 = por %p522_p2, %p521_p0 }
  0x31   : > { %v147_v11 = vadd.f32 %v146_v9, %v140_v8  ;;  %p519_p13 = pneg %p518_p12 }
  0x33   : > { %v148_v13 = vadd.f32 %v147_v11, %v141_v10  ;;  %p524_p4 = pnand %p523_p3, %p519_p13 }
  0x35   : > { %v149_v14 = vadd.f32 %v148_v13, %v142_v12 }
  0x37   : > { %150 = vadd.xlane.f32.xlu0 %v149_v14 }
  0xaa   : > { %v151_v15 = vpop.xlane.xlu0 %150 }
  0xab   : > { %v152_v16 = vmul.f32 0.0009765625, %v151_v15 }
  0xad   : > { %v153_v17 = vsub.f32 %v135_v0, %v152_v16  ;;  %v154_v18 = vsub.f32 %v136_v1, %v152_v16  ;;  %v155_v19 = vsub.f32 %v137_v2, %v152_v16  ;;  %v156_v20 = vsub.f32 %v138_v4, %v152_v16 }
  0xae   : > { %v157_v21 = vsub.f32 %v139_v6, %v152_v16  ;;  %v158_v22 = vsub.f32 %v140_v8, %v152_v16  ;;  %v159_v23 = vsub.f32 %v141_v10, %v152_v16  ;;  %v160_v24 = vsub.f32 %v142_v12, %v152_v16 }
  0xaf   : > { %176 = vmatpush.xpose.msra.mxu0 %v153_v17  ;;  %196 = vmatpush.xpose.msra.mxu1 %v154_v18 }
  0xb0   : > { %216 = vmatpush.xpose.msra.mxu2 %v155_v19  ;;  %236 = vmatpush.xpose.msra.mxu3 %v156_v20 }
  0xb2   : > { %177 = vmatmul.f32.vlgmr.msra.gmra.mxu0 %v153_v17  ;;  %197 = vmatmul.f32.vlgmr.msra.gmra.mxu1 %v154_v18 }
  0xb3   : > { %256 = vmatpush.xpose.msrb.mxu0 %v157_v21  ;;  %276 = vmatpush.xpose.msrb.mxu1 %v158_v22 }
  0xb4   : > { %296 = vmatpush.xpose.msrb.mxu2 %v159_v23  ;;  %316 = vmatpush.xpose.msrb.mxu3 %v160_v24 }
  0xb5   : > { %217 = vmatmul.f32.vlgmr.msra.gmra.mxu2 %v155_v19  ;;  %237 = vmatmul.f32.vlgmr.msra.gmra.mxu3 %v156_v20 }
  0xba   : > { %257 = vmatmul.f32.vlgmr.msrb.gmra.mxu0 %v157_v21  ;;  %277 = vmatmul.f32.vlgmr.msrb.gmra.mxu1 %v158_v22 }
  0xbd   : > { %297 = vmatmul.f32.vlgmr.msrb.gmra.mxu2 %v159_v23  ;;  %317 = vmatmul.f32.vlgmr.msrb.gmra.mxu3 %v160_v24 }
 0x12f   : > { %v178_v25 = vpop.f32.mrf.mxu0  ;;  %v198_v26 = vpop.f32.mrf.mxu1 }
 0x130   : > { %v199_v27 = vadd.f32 %v198_v26, %v178_v25 }
 0x137   : > { %v258_v32 = vpop.f32.mrf.mxu0  ;;  %v278_v34 = vpop.f32.mrf.mxu1 }
 0x138   : > { %v218_v28 = vpop.f32.mrf.mxu2  ;;  %v238_v29 = vpop.f32.mrf.mxu3 }
 0x139   : > { %v219_v30 = vadd.f32 %v218_v28, %v199_v27 }
 0x13b   : > { %v239_v31 = vadd.f32 %v238_v29, %v219_v30 }
 0x13d   : > { %v259_v33 = vadd.f32 %v258_v32, %v239_v31 }
 0x13f   : > { %v279_v35 = vadd.f32 %v278_v34, %v259_v33 }
 0x140   : > { %v298_v36 = vpop.f32.mrf.mxu2  ;;  %v318_v38 = vpop.f32.mrf.mxu3 }
 0x141   : > { %v299_v37 = vadd.f32 %v298_v36, %v279_v35 }
 0x143   : > { %v319_v39 = vadd.f32 %v318_v38, %v299_v37 }
 0x145   : > { %v321_v40 = vmul.f32 0.0009775171, %v319_v39 }
 0x147   : > { %323 = vst.msk [vmem:[%s134_s27] sm:$0xff] %vm322_vm0, %v321_v40 }
 0x148   : > { %527 = shalt.err (!%p524_p4)
}
 0x149   : > { %426 = dma.vmem_to_hbm [thread:$0]  (%p627_p10), %s338_s28, 128, %s340_s29, %s325_s10  }
 0x14a PF: > { %p437_p5 = scmp.ge.s32.totalorder %s566_s9, 2  ;;  %s351_s14 = sand.u32 1, %s554_s6  }
 0x14b   : > { %s352_s16 = scalar_lea.sflag [#allocation4], %s351_s14 }
 0x14c   : > { %p433_p7 = pnand %p437_p5, %p631_p11 }
 0x14e   : > { %p434_p8 = pneg %p433_p7 }
 0x150   : > { %549 = dma.done.wait (%p434_p8), %s352_s16, 128  }
 0x151   : > { %551 = vsyncadd (%p434_p8), %s352_s16, 4294967168  ;;  %p14_p9 = scmp.ge.s32.totalorder %s603_s12, 5   ;;  %s711_s6 = smov %s558_s7 }
 0x152   : > { %s712_s7 = smov %s562_s8  ;;  %s713_s8 = smov %s615_s15 }
 0x153   : > { %s714_s9 = smov %s603_s12  ;;  %16 = sbr.rel (!%p14_p9) target bundleno = 5 (0x5), region = 69 }
 0x158   :  { %358 = vsyncpa [#allocation3], 1 }
 0x159   :  { %360 = vsyncpa [#allocation3 + $0x1], 1 }
 0x15a   :  { %361 = vsyncpa [#allocation4], 1 }
 0x15b   :  { %363 = vsyncpa [#allocation4 + $0x1], 1 }

</bundles_post_ra>
